<compile_context>
chip_gen: v5e
topology: v5e:2x2
jax: 0.10.0
libtpu: 0.0.40
codegen_flags: <defaults>
</compile_context>

<pallas_src>
import functools

import jax
import jax.numpy as jnp
from jax import lax
from jax.experimental import pallas as pl
from jax.experimental.pallas import tpu as pltpu


def _round_up(x, m):
    return ((x + m - 1) // m) * m


# ---------------------------------------------------------------------------
# Pallas kernels
# ---------------------------------------------------------------------------
def _power_step_kernel(p_ref, m_ref, picol_ref, pirow_ref, o_ref, acc_ref, *,
                       fuse_epilogue):
    """One step of the matrix power: out = P @ M, optionally fused with the
    autocovariance epilogue out[i,j] = pi[i] * (out[i,j] - pi[j])."""

    @pl.when(pl.program_id(2) == 0)
    def _():
        acc_ref[...] = jnp.zeros_like(acc_ref)

    acc_ref[...] += jnp.dot(p_ref[...], m_ref[...],
                            preferred_element_type=jnp.float32)

    @pl.when(pl.program_id(2) == pl.num_programs(2) - 1)
    def _():
        acc = acc_ref[...]
        if fuse_epilogue:
            # diag(pi) @ P - outer(pi, pi) == pi_i * (P_ij - pi_j)
            acc = picol_ref[...] * (acc - pirow_ref[...])
        o_ref[...] = acc


def _epilogue_kernel(p_ref, picol_ref, pirow_ref, o_ref):
    """Standalone epilogue for scaling_parameter <= 1 (no matmul needed)."""
    o_ref[...] = picol_ref[...] * (p_ref[...] - pirow_ref[...])


# ---------------------------------------------------------------------------
# pallas_call wrappers
# ---------------------------------------------------------------------------
def _power_step_call(P, M, pi_col, pi_row, tile, *, fuse_epilogue):
    n_pad = P.shape[0]
    g = n_pad // tile
    kernel = functools.partial(_power_step_kernel, fuse_epilogue=fuse_epilogue)

    flops = 2 * n_pad * n_pad * n_pad
    bytes_accessed = 4 * n_pad * n_pad * (2 * g + 1)

    return pl.pallas_call(
        kernel,
        out_shape=jax.ShapeDtypeStruct((n_pad, n_pad), jnp.float32),
        grid_spec=pltpu.PrefetchScalarGridSpec(
            num_scalar_prefetch=0,
            grid=(g, g, g),
            in_specs=[
                pl.BlockSpec((tile, tile), lambda i, j, k: (i, k)),   # P (lhs)
                pl.BlockSpec((tile, tile), lambda i, j, k: (k, j)),   # M (rhs)
                pl.BlockSpec((tile, 1), lambda i, j, k: (i, 0)),      # pi column
                pl.BlockSpec((1, tile), lambda i, j, k: (0, j)),      # pi row
            ],
            out_specs=pl.BlockSpec((tile, tile), lambda i, j, k: (i, j)),
            scratch_shapes=[pltpu.VMEM((tile, tile), jnp.float32)],
        ),
        compiler_params=pltpu.CompilerParams(
            dimension_semantics=("parallel", "parallel", "arbitrary")),
        cost_estimate=pl.CostEstimate(flops=flops, transcendentals=0,
                                      bytes_accessed=bytes_accessed),
    )(P, M, pi_col, pi_row)


def _epilogue_call(P, pi_col, pi_row, tile):
    n_pad = P.shape[0]
    g = n_pad // tile
    return pl.pallas_call(
        _epilogue_kernel,
        out_shape=jax.ShapeDtypeStruct((n_pad, n_pad), jnp.float32),
        grid_spec=pltpu.PrefetchScalarGridSpec(
            num_scalar_prefetch=0,
            grid=(g, g),
            in_specs=[
                pl.BlockSpec((tile, tile), lambda i, j: (i, j)),
                pl.BlockSpec((tile, 1), lambda i, j: (i, 0)),
                pl.BlockSpec((1, tile), lambda i, j: (0, j)),
            ],
            out_specs=pl.BlockSpec((tile, tile), lambda i, j: (i, j)),
        ),
        compiler_params=pltpu.CompilerParams(
            dimension_semantics=("parallel", "parallel")),
    )(P, pi_col, pi_row)


# ---------------------------------------------------------------------------
# Forward
# ---------------------------------------------------------------------------
def autocovariance_forward(A, scaling_parameter, *, block=256):
    """A: [N, N] float32 (square, e.g. weighted adjacency). Returns [N, N]."""
    A = A.astype(jnp.float32)
    n = A.shape[0]
    k = int(scaling_parameter)
    if k < 0:
        raise NotImplementedError("negative scaling_parameter not supported")

    # --- cheap glue: degree, stationary distribution, row normalization ---
    d = jnp.sum(A, axis=1)
    pi = d / jnp.maximum(jnp.sum(jnp.abs(d)), 1e-12)   # F.normalize(d, p=1, dim=0)
    M = A / d[:, None]

    # --- pad to TPU-friendly square tiles (lane-dense T x T blocks) ---
    tile = min(block, _round_up(n, 128))
    n_pad = _round_up(n, tile)
    pad = n_pad - n
    M_pad = jnp.pad(M, ((0, pad), (0, pad)))
    pi_pad = jnp.pad(pi, (0, pad))
    pi_col = pi_pad.reshape(n_pad, 1)
    pi_row = pi_pad.reshape(1, n_pad)

    # --- matrix power + fused covariance epilogue (Pallas) ---
    if k <= 1:
        P = jnp.eye(n_pad, dtype=jnp.float32) if k == 0 else M_pad
        R_raw = _epilogue_call(P, pi_col, pi_row, tile)
    else:
        P = M_pad
        for step in range(k - 1):
            fuse = step == k - 2
            P = _power_step_call(P, M_pad, pi_col, pi_row, tile,
                                 fuse_epilogue=fuse)
        R_raw = P

    # --- cheap glue: global standardization (mean / unbiased std) ---
    R_raw = R_raw[:n, :n]
    mean = jnp.mean(R_raw)
    std = jnp.std(R_raw, ddof=1)
    return (R_raw - mean) / std


# ---------------------------------------------------------------------------
# Pure-JAX reference mirroring the PyTorch module
# ---------------------------------------------------------------------------
def _reference_forward(A, scaling_parameter):
    A = A.astype(jnp.float32)
    n = A.shape[0]
    d = jnp.sum(A, axis=1)
    pi = d / jnp.maximum(jnp.sum(jnp.abs(d)), 1e-12)
    M = A / d[:, None]
    P = jnp.eye(n, dtype=jnp.float32)
    for _ in range(int(scaling_parameter)):
        P = jnp.dot(P, M, precision=lax.Precision.HIGHEST)
    R = pi[:, None] * P - jnp.outer(pi, pi)      # == diag(pi) @ P - outer(pi, pi)
    return (R - jnp.mean(R)) / jnp.std(R, ddof=1)


if __name__ == "__main__":
    # Small shapes: 200x200 weighted adjacency (not a multiple of 128, so the
    # padding path is exercised), scaling_parameter = 3 (two MXU power steps).
    N = 200
    scaling_parameter = 3

    key = jax.random.PRNGKey(0)
    k1, k2 = jax.random.split(key)
    # Two-community weighted graph -> strong autocovariance signal.
    labels = jnp.arange(N) < N // 2
    same = (labels[:, None] == labels[None, :]).astype(jnp.float32)
    base = jax.random.uniform(k1, (N, N), jnp.float32, 0.05, 0.15)
    boost = jax.random.uniform(k2, (N, N), jnp.float32, 0.8, 1.2)
    A = base + same * boost
    A = 0.5 * (A + A.T)                      # symmetric, strictly positive

    R_ref = _reference_forward(A, scaling_parameter)

    # Multi-block grid (tile=128, grid (2,2,2)) and single-block grid (tile=256).
    for blk in (128, 256):
        R = autocovariance_forward(A, scaling_parameter, block=blk)
        R = jax.block_until_ready(R)
        assert R.shape == (N, N)
        assert jnp.allclose(R, R_ref, atol=5e-3, rtol=5e-3), (
            blk, float(jnp.max(jnp.abs(R - R_ref))))

    print("KERNEL_OK")
</pallas_src>

<mosaic_0001>
module attributes {stable_mosaic.version = 11 : i64} {
  func.func @_power_step_kernel(%arg0: i32, %arg1: i32, %arg2: i32, %arg3: memref<128x128xf32, #tpu.memory_space<vmem>>, %arg4: memref<128x128xf32, #tpu.memory_space<vmem>>, %arg5: memref<128x1xf32, #tpu.memory_space<vmem>>, %arg6: memref<1x128xf32, #tpu.memory_space<vmem>>, %arg7: memref<128x128xf32, #tpu.memory_space<vmem>>, %arg8: memref<128x128xf32, #tpu.memory_space<vmem>>) attributes {dimension_semantics = [#tpu.dimension_semantics<parallel>, #tpu.dimension_semantics<parallel>, #tpu.dimension_semantics<arbitrary>], iteration_bounds = array<i64: 2, 2, 2>, scalar_prefetch = 0 : i64, scratch_operands = 1 : i64, tpu.core_type = #tpu.core_type<tc>, window_params = [{transform_indices = @transform_0, window_bounds = array<i64: 128, 128>}, {transform_indices = @transform_1, window_bounds = array<i64: 128, 128>}, {transform_indices = @transform_2, window_bounds = array<i64: 128, 1>}, {transform_indices = @transform_3, window_bounds = array<i64: 1, 128>}, {transform_indices = @transform_4, window_bounds = array<i64: 128, 128>}]} {
    %c0_i32 = arith.constant 0 : i32
    %0 = arith.cmpi eq, %arg2, %c0_i32 : i32
    %1 = arith.extui %0 : i1 to i32
    %c0_i32_0 = arith.constant 0 : i32
    %2 = arith.cmpi ne, %1, %c0_i32_0 : i32
    scf.if %2 {
      %cst_9 = arith.constant 0.000000e+00 : f32
      %12 = vector.broadcast %cst_9 : f32 to vector<128x128xf32>
      %c0_10 = arith.constant 0 : index
      %c0_11 = arith.constant 0 : index
      %13 = vector.load %arg8[%c0_10, %c0_11] : memref<128x128xf32, #tpu.memory_space<vmem>>, vector<128x128xf32>
      tpu.vector_store %arg8[%c0_10, %c0_11], %12 {strides = array<i32>} : memref<128x128xf32, #tpu.memory_space<vmem>>, vector<128x128xf32>,
    } else {
    }
    %c0 = arith.constant 0 : index
    %c0_1 = arith.constant 0 : index
    %3 = vector.load %arg8[%c0, %c0_1] : memref<128x128xf32, #tpu.memory_space<vmem>>, vector<128x128xf32>
    %c0_2 = arith.constant 0 : index
    %c0_3 = arith.constant 0 : index
    %4 = vector.load %arg3[%c0_2, %c0_3] : memref<128x128xf32, #tpu.memory_space<vmem>>, vector<128x128xf32>
    %c0_4 = arith.constant 0 : index
    %c0_5 = arith.constant 0 : index
    %5 = vector.load %arg4[%c0_4, %c0_5] : memref<128x128xf32, #tpu.memory_space<vmem>>, vector<128x128xf32>
    %cst = arith.constant dense<0.000000e+00> : vector<128x128xf32>
    %6 = tpu.matmul %4, %5, %cst {dimension_numbers = #tpu.dot_dimension_numbers<[1], [0], [0], [1], [0, 0, 1, 1], [], []>} : vector<128x128xf32>, vector<128x128xf32>, vector<128x128xf32> -> vector<128x128xf32>
    %7 = arith.addf %3, %6 : vector<128x128xf32>
    %c0_6 = arith.constant 0 : index
    %c0_7 = arith.constant 0 : index
    %8 = vector.load %arg8[%c0_6, %c0_7] : memref<128x128xf32, #tpu.memory_space<vmem>>, vector<128x128xf32>
    tpu.vector_store %arg8[%c0_6, %c0_7], %7 {strides = array<i32>} : memref<128x128xf32, #tpu.memory_space<vmem>>, vector<128x128xf32>,
    %c1_i32 = arith.constant 1 : i32
    %9 = arith.cmpi eq, %arg2, %c1_i32 : i32
    %10 = arith.extui %9 : i1 to i32
    %c0_i32_8 = arith.constant 0 : i32
    %11 = arith.cmpi ne, %10, %c0_i32_8 : i32
    scf.if %11 {
      %c0_9 = arith.constant 0 : index
      %c0_10 = arith.constant 0 : index
      %12 = vector.load %arg8[%c0_9, %c0_10] : memref<128x128xf32, #tpu.memory_space<vmem>>, vector<128x128xf32>
      %c0_11 = arith.constant 0 : index
      %c0_12 = arith.constant 0 : index
      %13 = vector.load %arg7[%c0_11, %c0_12] : memref<128x128xf32, #tpu.memory_space<vmem>>, vector<128x128xf32>
      tpu.vector_store %arg7[%c0_11, %c0_12], %12 {strides = array<i32>} : memref<128x128xf32, #tpu.memory_space<vmem>>, vector<128x128xf32>,
    } else {
    }
    return
  }
  func.func @transform_0(%arg0: i32, %arg1: i32, %arg2: i32) -> (i32, i32) {
    %c0_i32 = arith.constant 0 : i32
    return %arg0, %arg2 : i32, i32
  }
  func.func @transform_1(%arg0: i32, %arg1: i32, %arg2: i32) -> (i32, i32) {
    %c0_i32 = arith.constant 0 : i32
    return %arg2, %arg1 : i32, i32
  }
  func.func @transform_2(%arg0: i32, %arg1: i32, %arg2: i32) -> (i32, i32) {
    %c0_i32 = arith.constant 0 : i32
    %c0_i32_0 = arith.constant 0 : i32
    return %arg0, %c0_i32 : i32, i32
  }
  func.func @transform_3(%arg0: i32, %arg1: i32, %arg2: i32) -> (i32, i32) {
    %c0_i32 = arith.constant 0 : i32
    %c0_i32_0 = arith.constant 0 : i32
    return %c0_i32, %arg1 : i32, i32
  }
  func.func @transform_4(%arg0: i32, %arg1: i32, %arg2: i32) -> (i32, i32) {
    %c0_i32 = arith.constant 0 : i32
    return %arg0, %arg1 : i32, i32
  }
}

</mosaic_0001>

<bundles_post_ra>
// kernel: tpu_custom_call.1
= control target key start
LH: loop header
LB: loop body
LE: loop exit
PB: predicated region body
PF: predicated region fallthrough
CT: control target
= control target key end

     0   :  { %s1535_s0 = inlined_call_operand.hbm [shape: f32[256,256], index: 0, kind: input, shape index: {}]   ;;  %s1536_s1 = inlined_call_operand.hbm [shape: f32[256,256], index: 1, kind: input, shape index: {}]   ;;  %s1537_s2 = inlined_call_operand.vmem [shape: f32[256,1], index: 2, kind: input, shape index: {}]   ;;  %s1538_s3 = inlined_call_operand.vmem [shape: f32[1,256], index: 3, kind: input, shape index: {}]   ;;  %s1539_s4 = inlined_call_operand.hbm [shape: f32[256,256], index: 4, kind: output, shape index: {}]  }
   0x1   :  { %1551 = sst [smem:[#allocation23_spill]] %s1535_s0 }
   0x2   :  { %1552 = sst [smem:[#allocation24_spill]] %s1539_s4 }
   0x3   :  { %9 = vsyncpa [#allocation4], 0 }
   0x4   :  { %11 = vsyncpa [#allocation4 + $0x1], 0 }
   0x5   :  { %12 = vsyncpa [#allocation7], 0 }
   0x6   :  { %14 = vsyncpa [#allocation7 + $0x1], 0 }
   0x7   :  { %15 = vsyncpa [#allocation5], 0 }
   0x8   :  { %17 = vsyncpa [#allocation5 + $0x1], 0  ;;  %s1176_s15 = smov 0   ;;  %s1178_s16 = smov 0  }
   0x9   :  { %s1180_s17 = smov 0   ;;  %s1182_s18 = smov 0  }
   0xa   :  { %s1184_s2 = smov 0   ;;  %s1186_s3 = smov 0  }
   0xb   :  { %s1188_s19 = smov 0   ;;  %s1190_s20 = smov 0  }
   0xc   :  { %s1192_s21 = smov 0   ;;  %s1194_s22 = smov 0  }
   0xd   :  { %s1196_s23 = smov 0   ;;  %s1198_s24 = smov 0  }
   0xe   :  { %s1200_s25 = smov 0   ;;  %s1202_s26 = smov 0  }
   0xf   :  { %s1204_s27 = smov 0   ;;  %s1206_s28 = smov 0  }
  0x10 LB: > { %1553 = sst [smem:[#allocation12_spill]] %s1114_s21  ;;  %s687_s29 = sadd.s32 4294967295, %s1142_s28   ;;  %s1142_s28 = sphi %s1206_s28, %s23_s28   ;;  %s1138_s27 = sphi %s1204_s27, %s1593_s27   ;;  %s1134_s26 = sphi %s1202_s26, %s1606_s26   ;;  %s1130_s25 = sphi %s1200_s25, %s1605_s25   ;;  %s1126_s24 = sphi %s1198_s24, %s1604_s24   ;;  %s1122_s23 = sphi %s1196_s23, %s1603_s23   ;;  %s1118_s22 = sphi %s1194_s22, %s1602_s22   ;;  %s1114_s21 = sphi %s1192_s21, %s1589_s21   ;;  %s1110_s20 = sphi %s1190_s20, %s1601_s20   ;;  %s1106_s19 = sphi %s1188_s19, %s1600_s19   ;;  %s1102_s3 = sphi %s1186_s3, %s1599_s3   ;;  %s1098_s2 = sphi %s1184_s2, %s1598_s2   ;;  %s1094_s18 = sphi %s1182_s18, %s1597_s18   ;;  %s1090_s17 = sphi %s1180_s17, %s1596_s17   ;;  %s1086_s16 = sphi %s1178_s16, %s1595_s16   ;;  %s1082_s15 = sphi %s1176_s15, %s1594_s15  }
  0x11   : > { %1554 = sst [smem:[#allocation13_spill]] %s1118_s22  ;;  %s35_s30 = sadd.s32 1, %s1130_s25 }
  0x12   : > { %1555 = sst [smem:[#allocation14_spill]] %s1122_s23  ;;  %p1256_p0 = scmp.ge.s32.totalorder %s35_s30, 2 }
  0x13   : > { %1556 = sst [smem:[#allocation15_spill]] %s1126_s24  ;;  %p58_p1 = scmp.ne.s32.totalorder %s1114_s21, %s1110_s20 }
  0x14   : > { %1557 = sst [smem:[#allocation16_spill]] %s1138_s27  ;;  %s1608_s30 = smov (%p1256_p0, %s35_s30), 0 }
  0x15   : > { %1559 = sst [smem:[#allocation17_spill]] %s1608_s30  ;;  %p59_p2 = scmp.eq.s32.totalorder %s1142_s28, 0 }
  0x16   : > { %p64_p3 = scmp.ne.s32.totalorder %s1110_s20, %s1106_s19  ;;  %s1272_s8 = ssub.s32 %s1130_s25, %s1608_s30 }
  0x17   : > { %p1274_p4 = scmp.eq.s32.totalorder %s687_s29, 0  ;;  %p1280_p5 = por %p59_p2, %p58_p1 }
  0x18   : > { %p1284_p6 = scmp.eq.s32.totalorder %s687_s29, 7  ;;  %p779_p8 = scmp.lt.s32.totalorder %s1142_s28, 8 }
  0x19   : > { %p1290_p7 = por %p1274_p4, %p64_p3  ;;  %s196_s13 = sand.u32 1, %s1114_s21  }
  0x1a   : > { %s691_s14 = sshll.u32 %s196_s13, 7  ;;  %s711_s19 = sshll.u32 %s1138_s27, 5 }
  0x1b   : > { %s205_s7 = sadd.s32 %s1130_s25, %s711_s19  ;;  %s200_s6 = scalar_lea.vmem [#allocation3], %s691_s14 }
  0x1c   : > { %s210_s30 = sshll.u32 %s200_s6, 4  ;;  %s694_s29 = sshll.u32 %s205_s7, 3  ;;  %s211_s30 = int_to_ptr.vmem [resolvable:$true] %s210_s30 }
  0x1d   : > { %s1564_s0 = sld [smem:[#allocation23_spill]]  ;;  %p769_p9 = pnand %p779_p8, %p1280_p5 }
  0x1e   : > { %s197_s6 = scalar_lea.sflag [#allocation4], %s196_s13  ;;  %s1542_s7 = smov 256  }
  0x1f   : > { %s1543_s19 = smov 128   ;;  %s1544_s22 = smov 8  }
  0x20   : > { %p699_p10 = scmp.ge.s32.totalorder %s1142_s28, 1  ;;  %p257_p11 = scmp.lt.s32.totalorder %s1142_s28, 9 }
  0x21   : > { %s688_s23 = sadd.s32 4294967294, %s1142_s28   ;;  %s79_s10 = sadd.s32 1, %s1102_s3 }
  0x22   : > { %p1310_p12 = pnand %p699_p10, %p257_p11  ;;  %p86_p13 = scmp.ne.s32.totalorder %s1102_s3, %s1098_s2 }
  0x23   : > { %s207_s24 = scalar_lea.hbm %s1564_s0, %s694_s29  ;;  %p92_p1 = scmp.ne.s32.totalorder %s1098_s2, %s1094_s18 }
  0x24   : > { %s208_s14 = sshll.u32 %s207_s24, 4  ;;  %s38_s24 = sadd.s32 1, %s1134_s26  ;;  %s209_s14 = int_to_ptr.hbm [resolvable:$true] %s208_s14 }
  0x25   : > { %771 = dma.hbm_to_vmem [thread:$0]  (!%p769_p9), %s209_s14, 2048, %s211_s30, %s197_s6, %s1542_s7, %s1543_s19, %s1544_s22  }
  0x26   : > { %s1610_s24 = smov (!%p1256_p0, %s38_s24), %s1134_s26  ;;  %s159_s30 = sadd.s32 1, %s1090_s17 }
  0x27   : > { %p40_p3 = scmp.ge.s32.totalorder %s1610_s24, 2  ;;  %p1327_p5 = por %p86_p13, %p59_p2 }
  0x28   : > { %p1333_p9 = por %p92_p1, %p1274_p4  ;;  %s1569_s5 = sadd.s32 1, %s1138_s27 }
  0x29   : > { %s1612_s24 = smov (%p40_p3, %s1610_s24), 0  ;;  %s1614_s5 = smov (!%p40_p3, %s1569_s5), %s1138_s27 }
  0x2a   : > { %1568 = sst [smem:[#allocation18_spill]] %s1612_s24  ;;  %s75_s18 = ssub.s32 %s1134_s26, %s1612_s24 }
  0x2b   : > { %p169_p0 = scmp.ne.s32.totalorder %s1090_s17, %s1086_s16  ;;  %p44_p2 = scmp.ge.s32.totalorder %s1614_s5, 2 }
  0x2c   : > { %s76_s14 = sor.u32 %s75_s18, %s1272_s8  ;;  %p175_p11 = scmp.ne.s32.totalorder %s1086_s16, %s1082_s15 }
  0x2d   : > { %p77_p10 = scmp.eq.s32.totalorder %s76_s14, 0  ;;  %p1349_p4 = por %p1284_p6, %p169_p0 }
  0x2e   : > { %s1616_s5 = smov (%p44_p2, %s1614_s5), 0  ;;  %p176_p3 = scmp.eq.s32.totalorder %s688_s23, 7 }
  0x2f   : > { %s1570_s9 = scalar_select %p1349_p4, 1, 0 }
  0x30   : > { %1572 = sst [smem:[#allocation20_spill]] %s1616_s5  ;;  %s46_s7 = ssub.s32 %s1138_s27, %s1616_s5 }
  0x31   : > { %1571 = sst [smem:[#allocation19_spill]] %s1570_s9  ;;  %s48_s19 = sor.u32 %s1272_s8, %s46_s7 }
  0x32   : > { %s1356_s6 = scalar_select %p77_p10, %s1102_s3, %s79_s10  }
  0x33   : > { %s156_s22 = sor.u32 %s75_s18, %s46_s7  ;;  %p49_p13 = scmp.eq.s32.totalorder %s48_s19, 0 }
  0x34   : > { %1573 = sst [smem:[#allocation21_spill]] %s1356_s6  ;;  %p157_p1 = scmp.eq.s32.totalorder %s156_s22, 0 }
  0x35   : > { %s220_s11 = sand.u32 1, %s1102_s3   ;;  %s1574_s14 = sadd.s32 1, %s1114_s21 }
  0x36   : > { %s1367_s0 = scalar_select %p49_p13, %s1114_s21, %s1574_s14  }
  0x37   : > { %s1370_s24 = scalar_select %p157_p1, %s1090_s17, %s159_s30  }
  0x38   : > { %1575 = sst [smem:[#allocation22_spill]] %s1367_s0  ;;  %p1372_p6 = por %p176_p3, %p175_p11 }
  0x39   : > { %s695_s10 = sshll.u32 %s220_s11, 7  ;;  %s712_s5 = sshll.u32 %s1130_s25, 5 }
  0x3a   : > { %s229_s27 = sadd.s32 %s1134_s26, %s712_s5  ;;  %s224_s7 = scalar_lea.vmem [#allocation6], %s695_s10 }
  0x3b   : > { %s698_s8 = sshll.u32 %s229_s27, 3  ;;  %s234_s19 = sshll.u32 %s224_s7, 4  ;;  %s235_s19 = int_to_ptr.vmem [resolvable:$true] %s234_s19 }
  0x3c   : > { %s231_s22 = scalar_lea.hbm %s1536_s1, %s698_s8  ;;  %p772_p0 = pnand %p779_p8, %p1327_p5 }
  0x3d   : > { %s232_s23 = sshll.u32 %s231_s22, 4  ;;  %s221_s30 = scalar_lea.sflag [#allocation7], %s220_s11  ;;  %s233_s23 = int_to_ptr.hbm [resolvable:$true] %s232_s23 }
  0x3e   : > { %s1577_s14 = smov 8   ;;  %s1578_s0 = smov 128  }
  0x3f   : > { %s1579_s21 = smov 256   ;;  %261 = sbr.rel (%p1310_p12) target bundleno = 337 (0x151), region = 36 }
  0x40   : > { %774 = dma.hbm_to_vmem [thread:$0]  (!%p772_p0), %s233_s23, 2048, %s235_s19, %s221_s30, %s1579_s21, %s1578_s0, %s1577_s14  }
  0x41   : > { %s263_s27 = sand.u32 (!%p1310_p12), 1, %s1110_s20  }
  0x42   : > { %s700_s5 = sshll.u32 (!%p1310_p12), %s263_s27, 7  ;;  %s264_s6 = scalar_lea.sflag (!%p1310_p12), [#allocation4], %s263_s27 }
  0x43   : > { %s1391_s10 = scalar_lea.vmem (!%p1310_p12), [#allocation3], %s700_s5 }
  0x44   : > { %1069 = dma.done.wait (%p1290_p7), %s264_s6, 2048  }
  0x45   : > { %1071 = vsyncadd (%p1290_p7), %s264_s6, 4294965248  ;;  %s273_s13 = sand.u32 1, %s1098_s2  }
  0x46   : > { %s701_s11 = sshll.u32 %s273_s13, 7  ;;  %s274_s0 = scalar_lea.sflag [#allocation7], %s273_s13 }
  0x47   : > { %s1398_s21 = scalar_lea.vmem [#allocation6], %s701_s11 }
  0x48   : > { %1073 = dma.done.wait (%p1333_p9), %s274_s0, 2048  }
  0x49   : > { %1075 = vsyncadd (%p1333_p9), %s274_s0, 4294965248  ;;  %s313_s4 = sand.u32 1, %s1086_s16   ;;  %s1580_s12 = sld [smem:[#allocation13_spill]] }
  0x4a   : > { %s702_s8 = sshll.u32 %s313_s4, 7 }
  0x4b   : > { %s1407_s7 = scalar_lea.vmem [#allocation8], %s702_s8 }
  0x4f   : > { %p703_p7 = scmp.ne.s32.totalorder %s1580_s12, 0 }
  0x51   : > { %331 = sbr.rel (%p703_p7) target bundleno = 103 (0x67), region = 48 }
  0x56   : > { %v1147_v0 = vmov 0.0  }
  0x57   : > { %332 = vst [vmem:[#allocation2 + $0x30] sm:$0xff] %v1147_v0 }
  0x58   : > { %333 = vst [vmem:[#allocation2] sm:$0xff] %v1147_v0 }
  0x59   : > { %334 = vst [vmem:[#allocation2 + $0x58] sm:$0xff] %v1147_v0 }
  0x5a   : > { %335 = vst [vmem:[#allocation2 + $0x18] sm:$0xff] %v1147_v0 }
  0x5b   : > { %336 = vst [vmem:[#allocation2 + $0x50] sm:$0xff] %v1147_v0 }
  0x5c   : > { %337 = vst [vmem:[#allocation2 + $0x68] sm:$0xff] %v1147_v0 }
  0x5d   : > { %338 = vst [vmem:[#allocation2 + $0x8] sm:$0xff] %v1147_v0 }
  0x5e   : > { %339 = vst [vmem:[#allocation2 + $0x48] sm:$0xff] %v1147_v0 }
  0x5f   : > { %340 = vst [vmem:[#allocation2 + $0x40] sm:$0xff] %v1147_v0 }
  0x60   : > { %341 = vst [vmem:[#allocation2 + $0x20] sm:$0xff] %v1147_v0 }
  0x61   : > { %342 = vst [vmem:[#allocation2 + $0x10] sm:$0xff] %v1147_v0 }
  0x62   : > { %343 = vst [vmem:[#allocation2 + $0x38] sm:$0xff] %v1147_v0 }
  0x63   : > { %344 = vst [vmem:[#allocation2 + $0x60] sm:$0xff] %v1147_v0 }
  0x64   : > { %345 = vst [vmem:[#allocation2 + $0x70] sm:$0xff] %v1147_v0 }
  0x65   : > { %346 = vst [vmem:[#allocation2 + $0x78] sm:$0xff] %v1147_v0 }
  0x66   : > { %347 = vst [vmem:[#allocation2 + $0x28] sm:$0xff] %v1147_v0 }
  0x67 PF: > { %v395_v1 = vld [vmem:[%s1398_s21 + $0x78] sm:$0xff]  ;;  %v394_v2 = vld [vmem:[%s1398_s21 + $0x70] sm:$0xff]  ;;  %v393_v3 = vld [vmem:[%s1398_s21 + $0x68] sm:$0xff]  ;;  %s1581_s29 = sld [smem:[#allocation13_spill]] }
  0x68   : > { %715 = vmatpush.msra.mxu2 %v395_v1  ;;  %716 = vmatpush.msra.mxu3 %v395_v1  ;;  %v392_v4 = vld [vmem:[%s1398_s21 + $0x60] sm:$0xff]  ;;  %v391_v5 = vld [vmem:[%s1398_s21 + $0x58] sm:$0xff]  ;;  %v390_v6 = vld [vmem:[%s1398_s21 + $0x50] sm:$0xff] }
  0x69   : > { %396 = vmatpush.msra.mxu0 %v395_v1  ;;  %714 = vmatpush.msra.mxu1 %v395_v1  ;;  %v389_v7 = vld [vmem:[%s1398_s21 + $0x48] sm:$0xff]  ;;  %v388_v8 = vld [vmem:[%s1398_s21 + $0x40] sm:$0xff]  ;;  %v387_v9 = vld [vmem:[%s1398_s21 + $0x38] sm:$0xff] }
  0x6a   : > { %718 = vmatpush.msra.mxu2 %v394_v2  ;;  %719 = vmatpush.msra.mxu3 %v394_v2  ;;  %v386_v10 = vld [vmem:[%s1398_s21 + $0x30] sm:$0xff]  ;;  %v385_v11 = vld [vmem:[%s1398_s21 + $0x28] sm:$0xff]  ;;  %v384_v12 = vld [vmem:[%s1398_s21 + $0x20] sm:$0xff] }
  0x6b   : > { %397 = vmatpush.msra.mxu0 %v394_v2  ;;  %717 = vmatpush.msra.mxu1 %v394_v2  ;;  %v383_v13 = vld [vmem:[%s1398_s21 + $0x18] sm:$0xff]  ;;  %v382_v14 = vld [vmem:[%s1398_s21 + $0x10] sm:$0xff]  ;;  %v381_v15 = vld [vmem:[%s1398_s21 + $0x8] sm:$0xff] }
  0x6c   : > { %721 = vmatpush.msra.mxu2 %v393_v3  ;;  %722 = vmatpush.msra.mxu3 %v393_v3  ;;  %v380_v16 = vld [vmem:[%s1398_s21] sm:$0xff]  ;;  %v373_v21 = vld [vmem:[%s1391_s10 + $0x48] sm:$0xff]  ;;  %v374_v25 = vld [vmem:[%s1391_s10 + $0x50] sm:$0xff] }
  0x6d   : > { %398 = vmatpush.msra.mxu0 %v393_v3  ;;  %720 = vmatpush.msra.mxu1 %v393_v3  ;;  %v372_v17 = vld [vmem:[%s1391_s10 + $0x40] sm:$0xff]  ;;  %v377_v22 = vld [vmem:[%s1391_s10 + $0x68] sm:$0xff]  ;;  %v378_v26 = vld [vmem:[%s1391_s10 + $0x70] sm:$0xff]  ;;  %p704_p8 = scmp.ne.s32.totalorder %s1581_s29, 1 }
  0x6e   : > { %724 = vmatpush.msra.mxu2 %v392_v4  ;;  %725 = vmatpush.msra.mxu3 %v392_v4  ;;  %v376_v18 = vld [vmem:[%s1391_s10 + $0x60] sm:$0xff]  ;;  %v365_v23 = vld [vmem:[%s1391_s10 + $0x8] sm:$0xff]  ;;  %v366_v27 = vld [vmem:[%s1391_s10 + $0x10] sm:$0xff] }
  0x6f   : > { %399 = vmatpush.msra.mxu0 %v392_v4  ;;  %723 = vmatpush.msra.mxu1 %v392_v4  ;;  %v364_v19 = vld [vmem:[%s1391_s10] sm:$0xff]  ;;  %v369_v24 = vld [vmem:[%s1391_s10 + $0x28] sm:$0xff]  ;;  %v370_v28 = vld [vmem:[%s1391_s10 + $0x30] sm:$0xff] }
  0x70   : > { %727 = vmatpush.msra.mxu2 %v391_v5  ;;  %728 = vmatpush.msra.mxu3 %v391_v5  ;;  %v368_v20 = vld [vmem:[%s1391_s10 + $0x20] sm:$0xff]  ;;  %v375_v29 = vld [vmem:[%s1391_s10 + $0x58] sm:$0xff]  ;;  %v348_v33 = vld [vmem:[#allocation2 + $0x30] sm:$0xff] }
  0x71   : > { %400 = vmatpush.msra.mxu0 %v391_v5  ;;  %726 = vmatpush.msra.mxu1 %v391_v5  ;;  %v379_v30 = vld [vmem:[%s1391_s10 + $0x78] sm:$0xff]  ;;  %v352_v34 = vld [vmem:[#allocation2 + $0x50] sm:$0xff]  ;;  %v356_v39 = vld [vmem:[#allocation2 + $0x40] sm:$0xff] }
  0x72   : > { %730 = vmatpush.msra.mxu2 %v390_v6  ;;  %731 = vmatpush.msra.mxu3 %v390_v6  ;;  %v367_v31 = vld [vmem:[%s1391_s10 + $0x18] sm:$0xff]  ;;  %v360_v40 = vld [vmem:[#allocation2 + $0x60] sm:$0xff]  ;;  %v353_v46 = vld [vmem:[#allocation2 + $0x68] sm:$0xff] }
  0x73   : > { %401 = vmatpush.msra.mxu0 %v390_v6  ;;  %729 = vmatpush.msra.mxu1 %v390_v6  ;;  %v371_v32 = vld [vmem:[%s1391_s10 + $0x38] sm:$0xff]  ;;  %v349_v45 = vld [vmem:[#allocation2] sm:$0xff]  ;;  %v361_v52 = vld [vmem:[#allocation2 + $0x70] sm:$0xff] }
  0x74   : > { %733 = vmatpush.msra.mxu2 %v389_v7  ;;  %734 = vmatpush.msra.mxu3 %v389_v7  ;;  %v357_v51 = vld [vmem:[#allocation2 + $0x20] sm:$0xff]  ;;  %v350_v57 = vld [vmem:[#allocation2 + $0x58] sm:$0xff]  ;;  %v354_v58 = vld [vmem:[#allocation2 + $0x8] sm:$0xff] }
  0x75   : > { %402 = vmatpush.msra.mxu0 %v389_v7  ;;  %732 = vmatpush.msra.mxu1 %v389_v7  ;;  %v358_v63 = vld [vmem:[#allocation2 + $0x10] sm:$0xff]  ;;  %v362_v0 = vld [vmem:[#allocation2 + $0x78] sm:$0xff]  ;;  %v355_v6 = vld [vmem:[#allocation2 + $0x48] sm:$0xff] }
  0x76   : > { %736 = vmatpush.msra.mxu2 %v388_v8  ;;  %737 = vmatpush.msra.mxu3 %v388_v8  ;;  %v351_v5 = vld [vmem:[#allocation2 + $0x18] sm:$0xff] }
  0x77   : > { %403 = vmatpush.msra.mxu0 %v388_v8  ;;  %735 = vmatpush.msra.mxu1 %v388_v8 }
  0x78   : > { %739 = vmatpush.msra.mxu2 %v387_v9  ;;  %740 = vmatpush.msra.mxu3 %v387_v9 }
  0x79   : > { %404 = vmatpush.msra.mxu0 %v387_v9  ;;  %738 = vmatpush.msra.mxu1 %v387_v9 }
  0x7a   : > { %742 = vmatpush.msra.mxu2 %v386_v10  ;;  %743 = vmatpush.msra.mxu3 %v386_v10 }
  0x7b   : > { %405 = vmatpush.msra.mxu0 %v386_v10  ;;  %741 = vmatpush.msra.mxu1 %v386_v10 }
  0x7c   : > { %745 = vmatpush.msra.mxu2 %v385_v11  ;;  %746 = vmatpush.msra.mxu3 %v385_v11 }
  0x7d   : > { %406 = vmatpush.msra.mxu0 %v385_v11  ;;  %744 = vmatpush.msra.mxu1 %v385_v11  ;;  %v359_v11 = vld [vmem:[#allocation2 + $0x38] sm:$0xff] }
  0x7e   : > { %748 = vmatpush.msra.mxu2 %v384_v12  ;;  %749 = vmatpush.msra.mxu3 %v384_v12 }
  0x7f   : > { %407 = vmatpush.msra.mxu0 %v384_v12  ;;  %747 = vmatpush.msra.mxu1 %v384_v12  ;;  %v363_v12 = vld [vmem:[#allocation2 + $0x28] sm:$0xff] }
  0x80   : > { %751 = vmatpush.msra.mxu2 %v383_v13  ;;  %752 = vmatpush.msra.mxu3 %v383_v13 }
  0x81   : > { %408 = vmatpush.msra.mxu0 %v383_v13  ;;  %750 = vmatpush.msra.mxu1 %v383_v13 }
  0x82   : > { %754 = vmatpush.msra.mxu2 %v382_v14  ;;  %755 = vmatpush.msra.mxu3 %v382_v14 }
  0x83   : > { %409 = vmatpush.msra.mxu0 %v382_v14  ;;  %753 = vmatpush.msra.mxu1 %v382_v14 }
  0x84   : > { %757 = vmatpush.msra.mxu2 %v381_v15  ;;  %758 = vmatpush.msra.mxu3 %v381_v15 }
  0x85   : > { %410 = vmatpush.msra.mxu0 %v381_v15  ;;  %756 = vmatpush.msra.mxu1 %v381_v15 }
  0x86   : > { %760 = vmatpush.msra.mxu2 %v380_v16  ;;  %761 = vmatpush.msra.mxu3 %v380_v16 }
  0x87   : > { %436 = vmatmul.f32.vlgmr.msra.gmra.mxu2 %v372_v17  ;;  %448 = vmatmul.f32.vlgmr.msra.gmra.mxu3 %v376_v18 }
  0x88   : > { %411 = vmatpush.msra.mxu0 %v380_v16  ;;  %759 = vmatpush.msra.mxu1 %v380_v16 }
  0x89   : > { %412 = vmatmul.f32.vlgmr.msra.gmra.mxu0 %v364_v19  ;;  %424 = vmatmul.f32.vlgmr.msra.gmra.mxu1 %v368_v20 }
  0x8f   : > { %439 = vmatmul.f32.gmra.mxu2 %v373_v21  ;;  %451 = vmatmul.f32.gmra.mxu3 %v377_v22 }
  0x91   : > { %415 = vmatmul.f32.gmra.mxu0 %v365_v23  ;;  %427 = vmatmul.f32.gmra.mxu1 %v369_v24 }
  0x97   : > { %442 = vmatmul.f32.gmra.mxu2 %v374_v25  ;;  %454 = vmatmul.f32.gmra.mxu3 %v378_v26 }
  0x99   : > { %418 = vmatmul.f32.gmra.mxu0 %v366_v27  ;;  %430 = vmatmul.f32.gmra.mxu1 %v370_v28 }
  0x9f   : > { %445 = vmatmul.f32.gmra.mxu2 %v375_v29  ;;  %457 = vmatmul.f32.gmra.mxu3 %v379_v30 }
  0xa1   : > { %421 = vmatmul.f32.gmra.mxu0 %v367_v31  ;;  %433 = vmatmul.f32.gmra.mxu1 %v371_v32 }
 0x106   : > { %v413_v35 = vpop.f32.mrf.mxu0  ;;  %v425_v36 = vpop.f32.mrf.mxu1 }
 0x107   : > { %v461_v37 = vadd.f32 %v413_v35, %v348_v33  ;;  %v465_v38 = vadd.f32 %v425_v36, %v352_v34 }
 0x109   : > { %477 = vst [vmem:[#allocation2 + $0x30] sm:$0xff] %v461_v37 }
 0x10a   : > { %481 = vst [vmem:[#allocation2 + $0x50] sm:$0xff] %v465_v38  ;;  %v437_v41 = vpop.f32.mrf.mxu2  ;;  %v449_v42 = vpop.f32.mrf.mxu3 }
 0x10b   : > { %v469_v43 = vadd.f32 %v437_v41, %v356_v39  ;;  %v473_v44 = vadd.f32 %v449_v42, %v360_v40 }
 0x10d   : > { %485 = vst [vmem:[#allocation2 + $0x40] sm:$0xff] %v469_v43 }
 0x10e   : > { %489 = vst [vmem:[#allocation2 + $0x60] sm:$0xff] %v473_v44  ;;  %v416_v47 = vpop.f32.mrf.mxu0  ;;  %v428_v48 = vpop.f32.mrf.mxu1 }
 0x10f   : > { %v462_v49 = vadd.f32 %v416_v47, %v349_v45  ;;  %v466_v50 = vadd.f32 %v428_v48, %v353_v46 }
 0x111   : > { %478 = vst [vmem:[#allocation2] sm:$0xff] %v462_v49 }
 0x112   : > { %482 = vst [vmem:[#allocation2 + $0x68] sm:$0xff] %v466_v50  ;;  %v440_v53 = vpop.f32.mrf.mxu2  ;;  %v452_v54 = vpop.f32.mrf.mxu3 }
 0x113   : > { %v470_v55 = vadd.f32 %v440_v53, %v357_v51  ;;  %v474_v56 = vadd.f32 %v452_v54, %v361_v52 }
 0x115   : > { %486 = vst [vmem:[#allocation2 + $0x20] sm:$0xff] %v470_v55 }
 0x116   : > { %490 = vst [vmem:[#allocation2 + $0x70] sm:$0xff] %v474_v56  ;;  %v419_v59 = vpop.f32.mrf.mxu0  ;;  %v431_v60 = vpop.f32.mrf.mxu1 }
 0x117   : > { %v463_v61 = vadd.f32 %v419_v59, %v350_v57  ;;  %v467_v62 = vadd.f32 %v431_v60, %v354_v58 }
 0x119   : > { %479 = vst [vmem:[#allocation2 + $0x58] sm:$0xff] %v463_v61 }
 0x11a   : > { %483 = vst [vmem:[#allocation2 + $0x8] sm:$0xff] %v467_v62  ;;  %v443_v1 = vpop.f32.mrf.mxu2  ;;  %v455_v2 = vpop.f32.mrf.mxu3 }
 0x11b   : > { %v471_v3 = vadd.f32 %v443_v1, %v358_v63  ;;  %v475_v4 = vadd.f32 %v455_v2, %v362_v0 }
 0x11d   : > { %487 = vst [vmem:[#allocation2 + $0x10] sm:$0xff] %v471_v3 }
 0x11e   : > { %491 = vst [vmem:[#allocation2 + $0x78] sm:$0xff] %v475_v4  ;;  %v422_v7 = vpop.f32.mrf.mxu0  ;;  %v434_v8 = vpop.f32.mrf.mxu1 }
 0x11f   : > { %v464_v9 = vadd.f32 %v422_v7, %v351_v5  ;;  %v468_v10 = vadd.f32 %v434_v8, %v355_v6 }
 0x121   : > { %480 = vst [vmem:[#allocation2 + $0x18] sm:$0xff] %v464_v9 }
 0x122   : > { %484 = vst [vmem:[#allocation2 + $0x48] sm:$0xff] %v468_v10  ;;  %v446_v13 = vpop.f32.mrf.mxu2  ;;  %v458_v14 = vpop.f32.mrf.mxu3  ;;  %496 = sbr.rel (%p704_p8) target bundleno = 312 (0x138), region = 52 }
 0x123   : > { %v472_v15 = vadd.f32 %v446_v13, %v359_v11  ;;  %v476_v16 = vadd.f32 %v458_v14, %v363_v12 }
 0x125   : > { %488 = vst [vmem:[#allocation2 + $0x38] sm:$0xff] %v472_v15 }
 0x126   : > { %492 = vst [vmem:[#allocation2 + $0x28] sm:$0xff] %v476_v16 }
 0x127   : > { %v497_v17 = vld [vmem:[#allocation2 + $0x30] sm:$0xff]  ;;  %v498_v18 = vld [vmem:[#allocation2] sm:$0xff]  ;;  %v499_v19 = vld [vmem:[#allocation2 + $0x58] sm:$0xff] }
 0x128   : > { %513 = vst [vmem:[%s1407_s7] sm:$0xff] %v497_v17  ;;  %v500_v20 = vld [vmem:[#allocation2 + $0x18] sm:$0xff]  ;;  %v501_v21 = vld [vmem:[#allocation2 + $0x50] sm:$0xff]  ;;  %v502_v22 = vld [vmem:[#allocation2 + $0x68] sm:$0xff] }
 0x129   : > { %514 = vst [vmem:[%s1407_s7 + $0x8] sm:$0xff] %v498_v18  ;;  %v503_v23 = vld [vmem:[#allocation2 + $0x8] sm:$0xff]  ;;  %v505_v25 = vld [vmem:[#allocation2 + $0x40] sm:$0xff]  ;;  %v507_v27 = vld [vmem:[#allocation2 + $0x10] sm:$0xff] }
 0x12a   : > { %515 = vst [vmem:[%s1407_s7 + $0x10] sm:$0xff] %v499_v19  ;;  %v504_v24 = vld [vmem:[#allocation2 + $0x48] sm:$0xff]  ;;  %v506_v26 = vld [vmem:[#allocation2 + $0x20] sm:$0xff]  ;;  %v510_v30 = vld [vmem:[#allocation2 + $0x70] sm:$0xff] }
 0x12b   : > { %516 = vst [vmem:[%s1407_s7 + $0x18] sm:$0xff] %v500_v20  ;;  %v509_v29 = vld [vmem:[#allocation2 + $0x60] sm:$0xff]  ;;  %v511_v31 = vld [vmem:[#allocation2 + $0x78] sm:$0xff] }
 0x12c   : > { %517 = vst [vmem:[%s1407_s7 + $0x20] sm:$0xff] %v501_v21  ;;  %v508_v28 = vld [vmem:[#allocation2 + $0x38] sm:$0xff] }
 0x12d   : > { %518 = vst [vmem:[%s1407_s7 + $0x28] sm:$0xff] %v502_v22  ;;  %v512_v32 = vld [vmem:[#allocation2 + $0x28] sm:$0xff] }
 0x12e   : > { %519 = vst [vmem:[%s1407_s7 + $0x30] sm:$0xff] %v503_v23 }
 0x12f   : > { %520 = vst [vmem:[%s1407_s7 + $0x38] sm:$0xff] %v504_v24 }
 0x130   : > { %521 = vst [vmem:[%s1407_s7 + $0x40] sm:$0xff] %v505_v25 }
 0x131   : > { %522 = vst [vmem:[%s1407_s7 + $0x48] sm:$0xff] %v506_v26 }
 0x132   : > { %523 = vst [vmem:[%s1407_s7 + $0x50] sm:$0xff] %v507_v27 }
 0x133   : > { %524 = vst [vmem:[%s1407_s7 + $0x58] sm:$0xff] %v508_v28 }
 0x134   : > { %525 = vst [vmem:[%s1407_s7 + $0x60] sm:$0xff] %v509_v29 }
 0x135   : > { %526 = vst [vmem:[%s1407_s7 + $0x68] sm:$0xff] %v510_v30 }
 0x136   : > { %527 = vst [vmem:[%s1407_s7 + $0x70] sm:$0xff] %v511_v31 }
 0x137   : > { %528 = vst [vmem:[%s1407_s7 + $0x78] sm:$0xff] %v512_v32 }
 0x138 PF: > { %s1582_s19 = sld [smem:[#allocation15_spill]]  ;;  %s544_s14 = sshll.u32 %s1407_s7, 4  ;;  %s545_s14 = int_to_ptr.vmem [resolvable:$true] %s544_s14 }
 0x139   : > { %s1583_s18 = sld [smem:[#allocation14_spill]]  ;;  %s530_s0 = scalar_lea.sflag [#allocation5], %s313_s4 }
 0x13a   : > { %s1585_s10 = sld [smem:[#allocation24_spill]] }
 0x13e   : > { %s713_s23 = sshll.u32 %s1582_s19, 5 }
 0x13f   : > { %s541_s30 = sadd.s32 %s1583_s18, %s713_s23 }
 0x140   : > { %s708_s27 = sshll.u32 %s541_s30, 3  ;;  %s996_s7 = scalar_lea.hbm %s1585_s10, 512 }
 0x141   : > { %s543_s13 = scalar_lea.hbm %s1585_s10, %s708_s27 }
 0x142   : > { %s546_s11 = sshll.u32 %s543_s13, 4  ;;  %s547_s11 = int_to_ptr.hbm [resolvable:$true] %s546_s11 }
 0x143   : > { %s990_s21 = sshra.s32 %s547_s11, 4  ;;  %s991_s21 = int_to_ptr.hbm [resolvable:$true] %s990_s21 }
 0x144   : > { %s992_s8 = scalar_lea.hbm %s991_s21, 128  ;;  %p997_p2 = scmp.lt.s32.totalorder %s991_s21, %s1585_s10 }
 0x145   : > { %p993_p12 = scmp.ne.s32.totalorder %s991_s21, %s992_s8  ;;  %p998_p10 = scmp.lt.s32.totalorder %s996_s7, %s992_s8 }
 0x147   : > { %p994_p5 = pnand %p993_p12, %p1349_p4  ;;  %p999_p11 = por %p998_p10, %p997_p2 }
 0x149   : > { %p995_p9 = pneg %p994_p5 }
 0x14b   : > { %p1000_p13 = pnand %p999_p11, %p995_p9 }
 0x14d   : > { %1003 = shalt.err (!%p1000_p13)
}
 0x14e   : > { %s1148_s4 = smov 128   ;;  %s1149_s23 = smov 256  }
 0x14f   : > { %s1150_s30 = smov 8  }
 0x150   : > { %766 = dma.vmem_to_hbm [thread:$0]  (%p1349_p4), %s545_s14, 2048, %s547_s11, %s530_s0, %s1148_s4, %s1149_s23, %s1150_s30  }
 0x151 PF: > { %p780_p1 = scmp.ge.s32.totalorder %s1142_s28, 2  ;;  %s561_s27 = sand.u32 1, %s1082_s15  }
 0x152   : > { %s562_s5 = scalar_lea.sflag [#allocation5], %s561_s27 }
 0x153   : > { %p776_p3 = pnand %p780_p1, %p1372_p6 }
 0x155   : > { %p777_p0 = pneg %p776_p3 }
 0x157   : > { %1077 = dma.done.wait (%p777_p0), %s562_s5, 2048  }
 0x158   : > { %1079 = vsyncadd (%p777_p0), %s562_s5, 4294965248  ;;  %s23_s28 = sadd.s32 1, %s1142_s28   ;;  %s1587_s22 = sld [smem:[#allocation21_spill]] }
 0x159   : > { %p1482_p7 = scmp.ge.s32.totalorder %s23_s28, 10   ;;  %s1588_s14 = sld [smem:[#allocation12_spill]] }
 0x15a   : > { %s1589_s21 = sld [smem:[#allocation22_spill]]  ;;  %s1594_s15 = smov %s1086_s16 }
 0x15b   : > { %s1590_s9 = sld [smem:[#allocation16_spill]]  ;;  %s1595_s16 = smov %s1090_s17 }
 0x15c   : > { %s1591_s13 = sld [smem:[#allocation17_spill]]  ;;  %s1596_s17 = smov %s1370_s24 }
 0x15d   : > { %s1592_s11 = sld [smem:[#allocation18_spill]]  ;;  %s1597_s18 = smov %s1098_s2 }
 0x15e   : > { %s1593_s27 = sld [smem:[#allocation20_spill]]  ;;  %s1598_s2 = smov %s1102_s3 }
 0x15f   : > { %s1599_s3 = smov %s1587_s22  ;;  %s1600_s19 = smov %s1110_s20 }
 0x160   : > { %s1601_s20 = smov %s1588_s14  ;;  %s1602_s22 = smov %s1130_s25 }
 0x161   : > { %s1603_s23 = smov %s1134_s26  ;;  %s1604_s24 = smov %s1590_s9 }
 0x162   : > { %s1605_s25 = smov %s1591_s13  ;;  %22 = sbr.rel (!%p1482_p7) target bundleno = 16 (0x10), region = 108 }
 0x163   : > { %s1606_s26 = smov %s1592_s11 }
 0x167   :  { %568 = vsyncpa [#allocation4], 1 }
 0x168   :  { %570 = vsyncpa [#allocation4 + $0x1], 1 }
 0x169   :  { %571 = vsyncpa [#allocation7], 1 }
 0x16a   :  { %573 = vsyncpa [#allocation7 + $0x1], 1 }
 0x16b   :  { %574 = vsyncpa [#allocation5], 1 }
 0x16c   :  { %576 = vsyncpa [#allocation5 + $0x1], 1 }

</bundles_post_ra>
